<compile_context>
chip_gen: v5e
topology: v5e:2x2
jax: 0.10.0
libtpu: 0.0.40
codegen_flags: <defaults>
</compile_context>

<pallas_src>
import functools

import jax
import jax.numpy as jnp
from jax.experimental import pallas as pl
from jax.experimental.pallas import tpu as pltpu


def _round_up(x: int, m: int) -> int:
    return ((x + m - 1) // m) * m


def encoder_kernel(x_ref, w1_ref, b1_ref, w2_ref, b2_ref, wh_ref, bh_ref,
                   out_ref):
    # x_ref: [TILE_B, Din_p] f32 ; w*_ref: bf16 ; b*_ref: [1, N] f32 ; out bf16.
    x = x_ref[...].astype(jnp.bfloat16)          # cast on VPU, free under MXU/DMA

    # fc1 + ReLU  (bf16 operands, f32 accumulate, f32 epilogue)
    h1 = jnp.dot(x, w1_ref[...], preferred_element_type=jnp.float32)
    h1 = jnp.maximum(h1 + b1_ref[...], 0.0)

    # fc2 + ReLU
    h2 = jnp.dot(h1.astype(jnp.bfloat16), w2_ref[...],
                 preferred_element_type=jnp.float32)
    h2 = jnp.maximum(h2 + b2_ref[...], 0.0)

    # fused mu|logvar head (single matmul, lane-dense padded output)
    out = jnp.dot(h2.astype(jnp.bfloat16), wh_ref[...],
                  preferred_element_type=jnp.float32)
    out_ref[...] = (out + bh_ref[...]).astype(out_ref.dtype)


def prepare_params(params):
    """One-time pad + cast of weights/biases (hoisted out of the per-call path)."""
    input_dim, hidden_dim = params["w1"].shape
    latent_dim = params["wmu"].shape[1]

    din_p = _round_up(input_dim, 128)
    dh_p = _round_up(hidden_dim, 128)
    dout_p = _round_up(2 * latent_dim, 128)

    def pad_w(w, rows, cols):
        out = jnp.zeros((rows, cols), jnp.bfloat16)
        return out.at[:w.shape[0], :w.shape[1]].set(w.astype(jnp.bfloat16))

    def pad_b(b, cols):
        out = jnp.zeros((1, cols), jnp.float32)
        return out.at[:, :b.shape[1]].set(b.astype(jnp.float32))

    prepped = {
        "w1": pad_w(params["w1"], din_p, dh_p),
        "b1": pad_b(params["b1"], dh_p),
        "w2": pad_w(params["w2"], dh_p, dh_p),
        "b2": pad_b(params["b2"], dh_p),
        # Fused head: [hidden, 2*latent] -> padded to [dh_p, dout_p].
        "wh": pad_w(jnp.concatenate([params["wmu"], params["wlv"]], axis=1),
                    dh_p, dout_p),
        "bh": pad_b(jnp.concatenate([params["bmu"], params["blv"]], axis=1),
                    dout_p),
    }
    return prepped, latent_dim


def encoder_forward(x, prepped, *, latent_dim: int, tile_b: int = 512):
    """x: [B, input_dim] float32. prepped: padded bf16 weights from prepare_params."""
    B, input_dim = x.shape
    din_p, dh_p = prepped["w1"].shape
    dout_p = prepped["wh"].shape[1]
    assert input_dim <= din_p

    # --- batch tiling: multiple of 16 (bf16 sublane packing), minimal padding.
    n_steps = max(1, -(-B // tile_b))
    tb = _round_up(-(-B // n_steps), 16)
    # Feed both TensorCores on multi-TC chips (v7x): prefer >= 2 grid steps.
    if _round_up(B, tb) // tb < 2 and tb >= 32:
        tb = _round_up(-(-tb // 2), 16)

    # --- VMEM budget: single-buffered resident weights (Buffered(1)),
    #     double-buffered x/out tiles, h1/h2 f32 temporaries + bf16 cast copies.
    try:
        phys_vmem = int(pltpu.get_tpu_info().vmem_capacity_bytes)
    except Exception:
        phys_vmem = 64 * 1024 * 1024          # v7x-safe lower bound
    vmem_cap = phys_vmem - (8 << 20)          # headroom for compiler scratch

    weight_bytes = (2 * (din_p * dh_p + dh_p * dh_p + dh_p * dout_p)
                    + 4 * (2 * dh_p + dout_p))

    def needed_bytes(tb_):
        tiles = 2 * tb_ * din_p * 4 + 2 * tb_ * dout_p * 2   # x (f32) / out (bf16), 2x buffered
        temps = 2 * tb_ * dh_p * (4 + 2)                      # h1, h2: f32 value + bf16 cast
        return weight_bytes + tiles + temps

    while needed_bytes(tb) + (4 << 20) > vmem_cap and tb > 16:
        tb = max(16, _round_up(tb // 2, 16))

    b_pad = _round_up(B, tb)
    vmem_limit = _round_up(needed_bytes(tb) + (4 << 20), 1 << 20)
    vmem_limit = int(min(max(vmem_limit, 32 << 20), vmem_cap))

    # --- pad x only if needed (kept f32; bf16 cast happens in-kernel).
    if b_pad != B or din_p != input_dim:
        x_in = jnp.pad(x, ((0, b_pad - B), (0, din_p - input_dim)))
    else:
        x_in = x

    const = lambda i: (0, 0)          # grid-invariant -> weights stay VMEM-resident
    single = pl.Buffered(1)           # no double-buffering for invariant operands

    out = pl.pallas_call(
        encoder_kernel,
        out_shape=jax.ShapeDtypeStruct((b_pad, dout_p), jnp.bfloat16),
        grid=(b_pad // tb,),
        in_specs=[
            pl.BlockSpec((tb, din_p), lambda i: (i, 0)),                 # x tile (f32)
            pl.BlockSpec((din_p, dh_p), const, pipeline_mode=single),    # w1 (resident)
            pl.BlockSpec((1, dh_p), const, pipeline_mode=single),        # b1
            pl.BlockSpec((dh_p, dh_p), const, pipeline_mode=single),     # w2 (resident)
            pl.BlockSpec((1, dh_p), const, pipeline_mode=single),        # b2
            pl.BlockSpec((dh_p, dout_p), const, pipeline_mode=single),   # fused head weight
            pl.BlockSpec((1, dout_p), const, pipeline_mode=single),      # fused head bias
        ],
        out_specs=pl.BlockSpec((tb, dout_p), lambda i: (i, 0)),
        compiler_params=pltpu.CompilerParams(
            dimension_semantics=("parallel",),
            vmem_limit_bytes=vmem_limit,
        ),
    )(x_in, prepped["w1"], prepped["b1"], prepped["w2"], prepped["b2"],
      prepped["wh"], prepped["bh"])

    mu = out[:B, :latent_dim].astype(jnp.float32)
    logvar = out[:B, latent_dim:2 * latent_dim].astype(jnp.float32)
    return mu, logvar


def init_params(key, input_dim, hidden_dim, latent_dim):
    """Deterministic synthetic init (matches nn.Linear shapes, stored transposed)."""
    ks = jax.random.split(key, 8)

    def lin(kw, kb, fan_in, fan_out):
        bound = 1.0 / jnp.sqrt(fan_in)
        w = jax.random.uniform(kw, (fan_in, fan_out), jnp.float32, -bound, bound)
        b = jax.random.uniform(kb, (1, fan_out), jnp.float32, -bound, bound)
        return w, b

    w1, b1 = lin(ks[0], ks[1], input_dim, hidden_dim)
    w2, b2 = lin(ks[2], ks[3], hidden_dim, hidden_dim)
    wmu, bmu = lin(ks[4], ks[5], hidden_dim, latent_dim)
    wlv, blv = lin(ks[6], ks[7], hidden_dim, latent_dim)
    return {"w1": w1, "b1": b1, "w2": w2, "b2": b2,
            "wmu": wmu, "bmu": bmu, "wlv": wlv, "blv": blv}


def encoder_ref(x, p):
    h1 = jax.nn.relu(x @ p["w1"] + p["b1"])
    h2 = jax.nn.relu(h1 @ p["w2"] + p["b2"])
    return h2 @ p["wmu"] + p["bmu"], h2 @ p["wlv"] + p["blv"]


if __name__ == "__main__":
    input_dim, hidden_dim, latent_dim = 32, 64, 16
    batch = 8

    key = jax.random.PRNGKey(0)
    kx, kp = jax.random.split(key)
    x = jax.random.normal(kx, (batch, input_dim), dtype=jnp.float32)
    params = init_params(kp, input_dim, hidden_dim, latent_dim)

    # One-time weight pad/cast (hoisted out of the per-call path).
    prepped, latent = prepare_params(params)
    prepped = jax.block_until_ready(prepped)

    fwd = jax.jit(functools.partial(encoder_forward, latent_dim=latent, tile_b=512))
    mu, logvar = fwd(x, prepped)
    jax.block_until_ready((mu, logvar))

    mu_ref, logvar_ref = encoder_ref(x, params)
    # bf16 matmul operands / bf16 output store (f32 accumulation) vs f32 ref.
    assert mu.shape == mu_ref.shape and logvar.shape == logvar_ref.shape
    assert jnp.allclose(mu, mu_ref, atol=5e-2, rtol=5e-2)
    assert jnp.allclose(logvar, logvar_ref, atol=5e-2, rtol=5e-2)

    print("KERNEL_OK")
</pallas_src>

<mosaic_0001>
module attributes {stable_mosaic.version = 11 : i64} {
  func.func @encoder_kernel(%arg0: i32, %arg1: memref<16x128xf32, #tpu.memory_space<vmem>>, %arg2: memref<128x128xbf16, #tpu.memory_space<vmem>>, %arg3: memref<1x128xf32, #tpu.memory_space<vmem>>, %arg4: memref<128x128xbf16, #tpu.memory_space<vmem>>, %arg5: memref<1x128xf32, #tpu.memory_space<vmem>>, %arg6: memref<128x128xbf16, #tpu.memory_space<vmem>>, %arg7: memref<1x128xf32, #tpu.memory_space<vmem>>, %arg8: memref<16x128xbf16, #tpu.memory_space<vmem>>) attributes {dimension_semantics = [#tpu.dimension_semantics<parallel>], iteration_bounds = array<i64: 1>, scalar_prefetch = 0 : i64, scratch_operands = 0 : i64, tpu.core_type = #tpu.core_type<tc>, window_params = [{transform_indices = @transform_0, window_bounds = array<i64: 16, 128>}, {pipeline_mode = #tpu.pipeline_mode<synchronous>, transform_indices = @transform_1, window_bounds = array<i64: 128, 128>}, {pipeline_mode = #tpu.pipeline_mode<synchronous>, transform_indices = @transform_2, window_bounds = array<i64: 1, 128>}, {pipeline_mode = #tpu.pipeline_mode<synchronous>, transform_indices = @transform_3, window_bounds = array<i64: 128, 128>}, {pipeline_mode = #tpu.pipeline_mode<synchronous>, transform_indices = @transform_4, window_bounds = array<i64: 1, 128>}, {pipeline_mode = #tpu.pipeline_mode<synchronous>, transform_indices = @transform_5, window_bounds = array<i64: 128, 128>}, {pipeline_mode = #tpu.pipeline_mode<synchronous>, transform_indices = @transform_6, window_bounds = array<i64: 1, 128>}, {transform_indices = @transform_7, window_bounds = array<i64: 16, 128>}]} {
    %c0 = arith.constant 0 : index
    %c0_0 = arith.constant 0 : index
    %0 = vector.load %arg1[%c0, %c0_0] : memref<16x128xf32, #tpu.memory_space<vmem>>, vector<16x128xf32>
    %1 = arith.truncf %0 : vector<16x128xf32> to vector<16x128xbf16>
    %c0_1 = arith.constant 0 : index
    %c0_2 = arith.constant 0 : index
    %2 = vector.load %arg2[%c0_1, %c0_2] : memref<128x128xbf16, #tpu.memory_space<vmem>>, vector<128x128xbf16>
    %cst = arith.constant dense<0.000000e+00> : vector<16x128xf32>
    %3 = tpu.matmul %1, %2, %cst {dimension_numbers = #tpu.dot_dimension_numbers<[1], [0], [0], [1], [0, 0, 1, 1], [], []>} : vector<16x128xbf16>, vector<128x128xbf16>, vector<16x128xf32> -> vector<16x128xf32>
    %c0_3 = arith.constant 0 : index
    %c0_4 = arith.constant 0 : index
    %4 = vector.load %arg3[%c0_3, %c0_4] : memref<1x128xf32, #tpu.memory_space<vmem>>, vector<1x128xf32>
    %5 = vector.broadcast %4 : vector<1x128xf32> to vector<16x128xf32>
    %6 = arith.addf %3, %5 : vector<16x128xf32>
    %cst_5 = arith.constant 0.000000e+00 : f32
    %7 = vector.broadcast %cst_5 : f32 to vector<16x128xf32>
    %8 = arith.maximumf %6, %7 : vector<16x128xf32>
    %9 = arith.truncf %8 : vector<16x128xf32> to vector<16x128xbf16>
    %c0_6 = arith.constant 0 : index
    %c0_7 = arith.constant 0 : index
    %10 = vector.load %arg4[%c0_6, %c0_7] : memref<128x128xbf16, #tpu.memory_space<vmem>>, vector<128x128xbf16>
    %cst_8 = arith.constant dense<0.000000e+00> : vector<16x128xf32>
    %11 = tpu.matmul %9, %10, %cst_8 {dimension_numbers = #tpu.dot_dimension_numbers<[1], [0], [0], [1], [0, 0, 1, 1], [], []>} : vector<16x128xbf16>, vector<128x128xbf16>, vector<16x128xf32> -> vector<16x128xf32>
    %c0_9 = arith.constant 0 : index
    %c0_10 = arith.constant 0 : index
    %12 = vector.load %arg5[%c0_9, %c0_10] : memref<1x128xf32, #tpu.memory_space<vmem>>, vector<1x128xf32>
    %13 = vector.broadcast %12 : vector<1x128xf32> to vector<16x128xf32>
    %14 = arith.addf %11, %13 : vector<16x128xf32>
    %cst_11 = arith.constant 0.000000e+00 : f32
    %15 = vector.broadcast %cst_11 : f32 to vector<16x128xf32>
    %16 = arith.maximumf %14, %15 : vector<16x128xf32>
    %17 = arith.truncf %16 : vector<16x128xf32> to vector<16x128xbf16>
    %c0_12 = arith.constant 0 : index
    %c0_13 = arith.constant 0 : index
    %18 = vector.load %arg6[%c0_12, %c0_13] : memref<128x128xbf16, #tpu.memory_space<vmem>>, vector<128x128xbf16>
    %cst_14 = arith.constant dense<0.000000e+00> : vector<16x128xf32>
    %19 = tpu.matmul %17, %18, %cst_14 {dimension_numbers = #tpu.dot_dimension_numbers<[1], [0], [0], [1], [0, 0, 1, 1], [], []>} : vector<16x128xbf16>, vector<128x128xbf16>, vector<16x128xf32> -> vector<16x128xf32>
    %c0_15 = arith.constant 0 : index
    %c0_16 = arith.constant 0 : index
    %20 = vector.load %arg7[%c0_15, %c0_16] : memref<1x128xf32, #tpu.memory_space<vmem>>, vector<1x128xf32>
    %21 = vector.broadcast %20 : vector<1x128xf32> to vector<16x128xf32>
    %22 = arith.addf %19, %21 : vector<16x128xf32>
    %23 = arith.truncf %22 : vector<16x128xf32> to vector<16x128xbf16>
    %c0_17 = arith.constant 0 : index
    %c0_18 = arith.constant 0 : index
    %24 = vector.load %arg8[%c0_17, %c0_18] : memref<16x128xbf16, #tpu.memory_space<vmem>>, vector<16x128xbf16>
    tpu.vector_store %arg8[%c0_17, %c0_18], %23 {strides = array<i32>} : memref<16x128xbf16, #tpu.memory_space<vmem>>, vector<16x128xbf16>,
    return
  }
  func.func @transform_0(%arg0: i32) -> (i32, i32) {
    %c0_i32 = arith.constant 0 : i32
    %c0_i32_0 = arith.constant 0 : i32
    return %arg0, %c0_i32 : i32, i32
  }
  func.func @transform_1(%arg0: i32) -> (i32, i32) {
    %c0_i32 = arith.constant 0 : i32
    %c0_i32_0 = arith.constant 0 : i32
    %c0_i32_1 = arith.constant 0 : i32
    return %c0_i32, %c0_i32_0 : i32, i32
  }
  func.func @transform_2(%arg0: i32) -> (i32, i32) {
    %c0_i32 = arith.constant 0 : i32
    %c0_i32_0 = arith.constant 0 : i32
    %c0_i32_1 = arith.constant 0 : i32
    return %c0_i32, %c0_i32_0 : i32, i32
  }
  func.func @transform_3(%arg0: i32) -> (i32, i32) {
    %c0_i32 = arith.constant 0 : i32
    %c0_i32_0 = arith.constant 0 : i32
    %c0_i32_1 = arith.constant 0 : i32
    return %c0_i32, %c0_i32_0 : i32, i32
  }
  func.func @transform_4(%arg0: i32) -> (i32, i32) {
    %c0_i32 = arith.constant 0 : i32
    %c0_i32_0 = arith.constant 0 : i32
    %c0_i32_1 = arith.constant 0 : i32
    return %c0_i32, %c0_i32_0 : i32, i32
  }
  func.func @transform_5(%arg0: i32) -> (i32, i32) {
    %c0_i32 = arith.constant 0 : i32
    %c0_i32_0 = arith.constant 0 : i32
    %c0_i32_1 = arith.constant 0 : i32
    return %c0_i32, %c0_i32_0 : i32, i32
  }
  func.func @transform_6(%arg0: i32) -> (i32, i32) {
    %c0_i32 = arith.constant 0 : i32
    %c0_i32_0 = arith.constant 0 : i32
    %c0_i32_1 = arith.constant 0 : i32
    return %c0_i32, %c0_i32_0 : i32, i32
  }
  func.func @transform_7(%arg0: i32) -> (i32, i32) {
    %c0_i32 = arith.constant 0 : i32
    %c0_i32_0 = arith.constant 0 : i32
    return %arg0, %c0_i32 : i32, i32
  }
}

</mosaic_0001>

<bundles_post_ra>
// kernel: encoder_forward.1
= control target key start
LH: loop header
LB: loop body
LE: loop exit
PB: predicated region body
PF: predicated region fallthrough
CT: control target
= control target key end

     0   :  { %12 = vsyncpa [#allocation3], 0  ;;  %s619_s0 = inlined_call_operand.vmem [shape: f32[16,128], index: 0, kind: input, shape index: {}]   ;;  %s620_s1 = inlined_call_operand.hbm [shape: bf16[128,128], index: 1, kind: input, shape index: {}]   ;;  %s621_s2 = inlined_call_operand.vmem [shape: f32[1,128], index: 2, kind: input, shape index: {}]   ;;  %s622_s3 = inlined_call_operand.hbm [shape: bf16[128,128], index: 3, kind: input, shape index: {}]   ;;  %s623_s4 = inlined_call_operand.vmem [shape: f32[1,128], index: 4, kind: input, shape index: {}]   ;;  %s624_s5 = inlined_call_operand.hbm [shape: bf16[128,128], index: 5, kind: input, shape index: {}]   ;;  %s625_s6 = inlined_call_operand.vmem [shape: f32[1,128], index: 6, kind: input, shape index: {}]   ;;  %s626_s7 = inlined_call_operand.vmem [shape: bf16[16,128], index: 7, kind: output, shape index: {}]  }
   0x1   :  { %13 = vsyncpa [#allocation5], 0  ;;  %s35_s26 = sshll.u32 %s622_s3, 4  ;;  %s547_s27 = smov [#allocation4]   ;;  %s36_s26 = int_to_ptr.hbm [resolvable:$true] %s35_s26 }
   0x2   :  { %s37_s28 = sshll.u32 %s547_s27, 4  ;;  %s20_s8 = sshll.u32 %s620_s1, 4  ;;  %s38_s28 = int_to_ptr.vmem [resolvable:$true] %s37_s28  ;;  %s21_s8 = int_to_ptr.hbm [resolvable:$true] %s20_s8 }
   0x3   :  { %s548_s9 = smov 64   ;;  %s549_s10 = smov 4  }
   0x4   :  { %43 = dma.hbm_to_vmem [thread:$0]  %s36_s26, 1024, %s38_s28, [#allocation5], %s548_s9, %s548_s9, %s549_s10  }
   0x5   :  { %s550_s11 = smov [#allocation2]   ;;  %s50_s15 = sshll.u32 %s624_s5, 4  ;;  %s51_s15 = int_to_ptr.hbm [resolvable:$true] %s50_s15 }
   0x6   :  { %s22_s12 = sshll.u32 %s550_s11, 4  ;;  %s551_s3 = smov [#allocation6]   ;;  %s23_s12 = int_to_ptr.vmem [resolvable:$true] %s22_s12 }
   0x7   :  { %28 = dma.hbm_to_vmem [thread:$0]  %s21_s8, 1024, %s23_s12, [#allocation3], %s548_s9, %s548_s9, %s549_s10  }
   0x8   :  { %s52_s16 = sshll.u32 %s551_s3, 4  ;;  %s53_s16 = int_to_ptr.vmem [resolvable:$true] %s52_s16 }
   0x9   :  { %58 = dma.hbm_to_vmem [thread:$0]  %s51_s15, 1024, %s53_s16, [#allocation5], %s548_s9, %s548_s9, %s549_s10  }
   0xa   :  { %543 = dma.done.wait [#allocation3], 1024  }
   0xb   :  { %544 = vsyncadd [#allocation3], 4294966272 }
   0xc   :  { %545 = dma.done.wait [#allocation5], 2048  }
   0xd   :  { %546 = vsyncadd [#allocation5], 4294965248  ;;  %v441_v0 = vld [vmem:[#allocation2 + $0x38] sm:$0xff]  ;;  %v440_v1 = vld [vmem:[#allocation2 + $0x30] sm:$0xff] }
   0xe   :  { %144 = vmatpush.bf16.msra.mxu0 %v441_v0  ;;  %v449_v2 = vld [vmem:[#allocation4 + $0x38] sm:$0xff]  ;;  %v448_v3 = vld [vmem:[#allocation4 + $0x30] sm:$0xff]  ;;  %v439_v4 = vld [vmem:[#allocation2 + $0x28] sm:$0xff] }
   0xf   :  { %229 = vmatpush.bf16.msra.mxu1 %v449_v2  ;;  %v447_v5 = vld [vmem:[#allocation4 + $0x28] sm:$0xff]  ;;  %v438_v6 = vld [vmem:[#allocation2 + $0x20] sm:$0xff]  ;;  %v437_v8 = vld [vmem:[#allocation2 + $0x18] sm:$0xff] }
  0x10   :  { %v446_v7 = vld [vmem:[#allocation4 + $0x20] sm:$0xff]  ;;  %v436_v9 = vld [vmem:[#allocation2 + $0x10] sm:$0xff]  ;;  %v435_v10 = vld [vmem:[#allocation2 + $0x8] sm:$0xff] }
  0x11   :  { %v434_v11 = vld [vmem:[#allocation2] sm:$0xff]  ;;  %v74_v13 = vld [vmem:[%s619_s0 + $0x8] sm:$0xff]  ;;  %v445_v15 = vld [vmem:[#allocation4 + $0x18] sm:$0xff] }
  0x12   :  { %145 = vmatpush.bf16.msra.mxu0 %v440_v1  ;;  %v73_v12 = vld [vmem:[%s619_s0] sm:$0xff]  ;;  %v444_v16 = vld [vmem:[#allocation4 + $0x10] sm:$0xff]  ;;  %v443_v17 = vld [vmem:[#allocation4 + $0x8] sm:$0xff] }
  0x13   :  { %230 = vmatpush.bf16.msra.mxu1 %v448_v3  ;;  %v75_v14 = vpack.c.bf16 %v74_v13, %v73_v12  ;;  %v442_v18 = vld [vmem:[#allocation4] sm:$0xff]  ;;  %v457_v19 = vld [vmem:[#allocation6 + $0x38] sm:$0xff]  ;;  %v456_v20 = vld [vmem:[#allocation6 + $0x30] sm:$0xff] }
  0x14   :  { %314 = vmatpush.bf16.msra.mxu2 %v457_v19  ;;  %v455_v21 = vld [vmem:[#allocation6 + $0x28] sm:$0xff]  ;;  %v454_v22 = vld [vmem:[#allocation6 + $0x20] sm:$0xff]  ;;  %v453_v31 = vld [vmem:[#allocation6 + $0x18] sm:$0xff] }
  0x15   :  { %v468_v24 = vld [vmem:[%s621_s2] ss:$0 sm:$0xff]  ;;  %v452_v32 = vld [vmem:[#allocation6 + $0x10] sm:$0xff]  ;;  %v451_v33 = vld [vmem:[#allocation6 + $0x8] sm:$0xff] }
  0x16   :  { %146 = vmatpush.bf16.msra.mxu0 %v439_v4  ;;  %v450_v34 = vld [vmem:[#allocation6] sm:$0xff] }
  0x17   :  { %231 = vmatpush.bf16.msra.mxu1 %v447_v5  ;;  %v469_v36 = vld [vmem:[%s623_s4] ss:$0 sm:$0xff] }
  0x18   :  { %315 = vmatpush.bf16.msra.mxu2 %v456_v20  ;;  %v470_v44 = vld [vmem:[%s625_s6] ss:$0 sm:$0xff] }
  0x1a   :  { %147 = vmatpush.bf16.msra.mxu0 %v438_v6 }
  0x1b   :  { %232 = vmatpush.bf16.msra.mxu1 %v446_v7 }
  0x1c   :  { %316 = vmatpush.bf16.msra.mxu2 %v455_v21 }
  0x1e   :  { %148 = vmatpush.bf16.msra.mxu0 %v437_v8 }
  0x1f   :  { %233 = vmatpush.bf16.msra.mxu1 %v445_v15 }
  0x20   :  { %317 = vmatpush.bf16.msra.mxu2 %v454_v22 }
  0x22   :  { %149 = vmatpush.bf16.msra.mxu0 %v436_v9 }
  0x23   :  { %234 = vmatpush.bf16.msra.mxu1 %v444_v16 }
  0x24   :  { %318 = vmatpush.bf16.msra.mxu2 %v453_v31 }
  0x26   :  { %150 = vmatpush.bf16.msra.mxu0 %v435_v10 }
  0x27   :  { %235 = vmatpush.bf16.msra.mxu1 %v443_v17 }
  0x28   :  { %319 = vmatpush.bf16.msra.mxu2 %v452_v32 }
  0x2a   :  { %151 = vmatpush.bf16.msra.mxu0 %v434_v11 }
  0x2b   :  { %236 = vmatpush.bf16.msra.mxu1 %v442_v18 }
  0x2c   :  { %320 = vmatpush.bf16.msra.mxu2 %v451_v33 }
  0x2d   :  { %152 = vmatmul.bf16.vlgmr.msra.gmra.mxu0 %v75_v14 }
  0x30   :  { %321 = vmatpush.bf16.msra.mxu2 %v450_v34 }
  0xaa   :  { %v153_v23 = vpop.f32.mrf.mxu0 }
  0xab   :  { %v154_v25 = vadd.f32 %v468_v24, %v153_v23 }
  0xad   :  { %v158_v28 = vmax.f32 %v154_v25, 0.0 }
  0xb2   :  { %v155_v26 = vpop.f32.mrf.mxu0 }
  0xb3   :  { %v156_v27 = vadd.f32 %v468_v24, %v155_v26 }
  0xb5   :  { %v159_v29 = vmax.f32 %v156_v27, 0.0 }
  0xb7   :  { %v160_v30 = vpack.c.bf16 %v159_v29, %v158_v28 }
  0xb9   :  { %237 = vmatmul.bf16.vlgmr.msra.gmra.mxu1 %v160_v30 }
 0x136   :  { %v238_v35 = vpop.f32.mrf.mxu1 }
 0x137   :  { %v239_v37 = vadd.f32 %v469_v36, %v238_v35 }
 0x139   :  { %v243_v40 = vmax.f32 %v239_v37, 0.0 }
 0x13e   :  { %v240_v38 = vpop.f32.mrf.mxu1 }
 0x13f   :  { %v241_v39 = vadd.f32 %v469_v36, %v240_v38 }
 0x141   :  { %v244_v41 = vmax.f32 %v241_v39, 0.0 }
 0x143   :  { %v245_v42 = vpack.c.bf16 %v244_v41, %v243_v40 }
 0x145   :  { %322 = vmatmul.bf16.vlgmr.msra.gmra.mxu2 %v245_v42 }
 0x1c8   :  { %v323_v43 = vpop.f32.mrf.mxu2 }
 0x1c9   :  { %v324_v46 = vadd.f32 %v470_v44, %v323_v43 }
 0x1d0   :  { %v325_v45 = vpop.f32.mrf.mxu2 }
 0x1d1   :  { %v326_v47 = vadd.f32 %v470_v44, %v325_v45 }
 0x1d3   :  { %v461_v48 = vpack.c.bf16 %v326_v47, %v324_v46 }
 0x1d5   :  { %462 = vst [vmem:[%s626_s7] sm:$0xff] %v461_v48  }
 0x1d6   :  { %336 = vsyncpa [#allocation3], 1 }
 0x1d7   :  { %337 = vsyncpa [#allocation5], 1 }

</bundles_post_ra>
